<compile_context>
chip_gen: v6e
topology: v6e:2x2x1
jax: 0.10.0
libtpu: 0.0.40
codegen_flags: <defaults>
</compile_context>

<pallas_src>
import jax
import jax.numpy as jnp
from jax.experimental import pallas as pl
from jax.experimental.pallas import tpu as pltpu


def _round_up(v: int, m: int) -> int:
    return ((v + m - 1) // m) * m


def _sublane_multiple(dtype) -> int:
    itemsize = jnp.dtype(dtype).itemsize
    return max(8, 32 // max(itemsize, 1))   # 8 for f32, 16 for bf16, 32 for int8/fp8


_PIO2 = 1.5707963267948966


def _arcsin01(x):
    """arcsin for x in [0, 1], f32, branchless Cephes-style minimax.

    Small branch (t <= 0.5): minimax polynomial (abs err ~1e-7).
    Large branch: arcsin(x) = pi/2 - 2*arcsin(sqrt((1-x)/2)).
    """
    big = x > 0.5
    t = jnp.where(big, jnp.sqrt(jnp.maximum((1.0 - x) * 0.5, 0.0)), x)
    z = t * t
    p = ((((4.2163199048e-2 * z + 2.4181311049e-2) * z
           + 4.5470025998e-2) * z + 7.4953002686e-2) * z
         + 1.6666752422e-1)
    asin_t = t + t * z * p
    return jnp.where(big, _PIO2 - 2.0 * asin_t, asin_t)


def _make_prompt_kernel(n_valid: int, m_valid: int, tn: int, m_pad: int, mm_dtype):
    """Fused chord-distance + arcsin^2 + masked partial-sum kernel for one N-tile."""

    def kernel(x_ref, ent_ref, out_ref):
        # x_ref   : (TN, D)   raw (un-normalized) input rows
        # ent_ref : (D, Mp)   pre-normalized prompt embeddings^T, zero-padded cols
        # out_ref : (8, Mp)   per-tile partial sums of 2*arcsin(chord/2)^2
        i = pl.program_id(0)
        eps2 = jnp.float32(1e-24)  # (F.normalize eps)**2

        x_raw = x_ref[...]                                   # (TN, D)
        xf = x_raw.astype(jnp.float32)

        # Row norms of x; normalization folded into post-matmul scaling (EUP rsqrt).
        sx = jnp.sum(xf * xf, axis=1, keepdims=True)          # (TN, 1)
        inv_nx = jax.lax.rsqrt(jnp.maximum(sx, eps2))          # (TN, 1)
        a = sx * (inv_nx * inv_nx)                             # ~1 (0 for zero rows)

        # Gram matrix on the MXU, f32 accumulation.
        g = jnp.dot(x_raw.astype(mm_dtype), ent_ref[...],
                    preferred_element_type=jnp.float32)        # (TN, Mp)

        # ||xn - en||^2 = |xn|^2 + 1 - 2*(x.en)/|x|   (|en|^2 == 1; padded cols masked)
        chord2 = a + 1.0 - 2.0 * (g * inv_nx)
        chord = jnp.sqrt(jnp.maximum(chord2, 0.0))

        half = jnp.clip(chord * 0.5, 0.0, 1.0)
        asn = _arcsin01(half)
        dists = 2.0 * asn * asn                                # (TN, Mp)

        # Mask padded rows (N padding) and padded columns (M padding).
        row = jax.lax.broadcasted_iota(jnp.int32, (tn, m_pad), 0) + i * tn
        col = jax.lax.broadcasted_iota(jnp.int32, (tn, m_pad), 1)
        valid = (row < n_valid) & (col < m_valid)
        dists = jnp.where(valid, dists, 0.0)

        # Partial reduce (TN, Mp) -> (8, Mp) with vreg-aligned static slices
        # (VPU adds only; no cross-sublane reduction, lane-dense store).
        nsub = tn // 8
        acc = dists[0:8, :]
        for r in range(1, nsub):
            acc = acc + dists[r * 8:(r + 1) * 8, :]
        out_ref[...] = acc

    return kernel


def prepare_prompt_embed(embed, *, matmul_dtype=None):
    """Normalize / transpose / pad the prompt embeddings once.

    Prompts are constant across the VQGAN-CLIP optimization loop, so hoist this
    out of the per-step path.  Returns (ent[D, Mp], M).
    Set matmul_dtype=jnp.bfloat16 to run the Gram matmul in bf16 (faster MXU,
    ~1e-3 rel. chord error, amplified by arcsin' near chord~2 — validate first).
    """
    m, d = embed.shape
    eps = 1e-12
    ef = embed.astype(jnp.float32)
    se = jnp.sum(ef * ef, axis=1, keepdims=True)
    en = ef * jax.lax.rsqrt(jnp.maximum(se, eps * eps))          # rows ~unit norm

    m_pad = _round_up(max(m, 1), 128)                            # lane-dense columns
    dtype = embed.dtype if matmul_dtype is None else matmul_dtype
    ent = jnp.zeros((d, m_pad), dtype).at[:, :m].set(en.T.astype(dtype))
    return ent, m


def prompt_forward_prepared(x, ent, m, weight=1.0, stop=float("-inf"), *, tile_n=512):
    """Prompt.forward with pre-processed prompt embeddings. Returns a scalar f32."""
    n, d = x.shape
    d_e, m_pad = ent.shape
    assert d == d_e and m_pad % 128 == 0 and 0 < m <= m_pad

    w = jnp.asarray(weight, jnp.float32)
    _stop = jnp.asarray(stop, jnp.float32)
    # TODO(synk): replace_grad(dists, maximum(dists, stop)) only changes the
    # backward pass; a custom_vjp would be needed to reproduce it for training.

    # N tiling: dtype-dependent sublane multiple; cap tn at ceil(N/2) so the
    # grid has >= 2 steps whenever possible (v7x has 2 TensorCores).
    sub = _sublane_multiple(x.dtype)
    n_sub = _round_up(n, sub)
    tn = _round_up(min(tile_n, n_sub), sub)
    half = _round_up(-(-n_sub // 2), sub)
    tn = max(sub, min(tn, half))
    n_pad = _round_up(n, tn)
    grid_n = n_pad // tn

    if n_pad != n:
        x = jnp.pad(x, ((0, n_pad - n), (0, 0)))

    kernel = _make_prompt_kernel(n, m, tn, m_pad, ent.dtype)

    x_item = jnp.dtype(x.dtype).itemsize
    e_item = jnp.dtype(ent.dtype).itemsize
    cost = pl.CostEstimate(
        flops=2 * n_pad * m_pad * d + 14 * n_pad * m_pad + 3 * n_pad * d,
        transcendentals=2 * n_pad * m_pad + n_pad,   # sqrt(chord), sqrt(arcsin fold), rsqrt/row
        bytes_accessed=x_item * n_pad * d + e_item * d * m_pad
        + 4 * grid_n * 8 * m_pad,
    )

    partial = pl.pallas_call(
        kernel,
        out_shape=jax.ShapeDtypeStruct((grid_n * 8, m_pad), jnp.float32),
        grid=(grid_n,),
        in_specs=[
            pl.BlockSpec((tn, d), lambda i: (i, 0)),       # x tile, streamed over N
            pl.BlockSpec((d, m_pad), lambda i: (0, 0)),    # embed^T, resident in VMEM
        ],
        out_specs=pl.BlockSpec((8, m_pad), lambda i: (i, 0)),  # per-tile partial sums
        compiler_params=pltpu.CompilerParams(
            dimension_semantics=("parallel",),
            vmem_limit_bytes=32 * 1024 * 1024,
        ),
        cost_estimate=cost,
    )(x, ent)

    mean = jnp.sum(partial) / jnp.float32(n * m)       # tiny (grid*8, 128) reduce
    return jnp.abs(w) * (jnp.sign(w) * mean)


def prompt_forward(x, embed, weight=1.0, stop=float("-inf"), *, tile_n=512):
    """Convenience wrapper: preprocess prompts then run the fused kernel."""
    ent, m = prepare_prompt_embed(embed)
    return prompt_forward_prepared(x, ent, m, weight=weight, stop=stop, tile_n=tile_n)


def _reference_forward(x, embed, weight=1.0):
    """Pure-JAX reference mirroring the PyTorch code."""
    eps = 1e-12
    w = jnp.asarray(weight, jnp.float32)
    xn = x / jnp.maximum(jnp.linalg.norm(x, axis=-1, keepdims=True), eps)
    en = embed / jnp.maximum(jnp.linalg.norm(embed, axis=-1, keepdims=True), eps)
    diff = xn[:, None, :] - en[None, :, :]
    d = jnp.linalg.norm(diff, axis=2) / 2.0
    dists = jnp.square(jnp.arcsin(d)) * 2.0
    dists = dists * jnp.sign(w)
    return jnp.abs(w) * jnp.mean(dists)


if __name__ == "__main__":
    key = jax.random.PRNGKey(0)
    k_in, k_emb = jax.random.split(key)

    # N cutout embeddings vs M prompt embeddings, CLIP-ish embedding dim D.
    N, M, D = 40, 3, 128
    x = jax.random.normal(k_in, (N, D), dtype=jnp.float32)
    embed = jax.random.normal(k_emb, (M, D), dtype=jnp.float32)

    # Hoisted prompt preprocessing (constant across optimization steps).
    ent, m_valid = prepare_prompt_embed(embed)

    # Multi-tile (grid >= 2) default config, plus a small-tile config that
    # exercises N padding / more grid steps, with positive and negative weights.
    for weight, tile_n in [(1.0, 512), (-0.75, 16)]:
        out = jax.block_until_ready(
            prompt_forward_prepared(x, ent, m_valid, weight=weight,
                                    stop=float("-inf"), tile_n=tile_n))
        ref = _reference_forward(x, embed, weight=weight)
        assert out.shape == (), out.shape
        assert jnp.allclose(out, ref, rtol=2e-5, atol=2e-5), (weight, tile_n, out, ref)

    # Convenience wrapper path (preprocessing inside).
    out = jax.block_until_ready(prompt_forward(x, embed, weight=0.5))
    ref = _reference_forward(x, embed, weight=0.5)
    assert jnp.allclose(out, ref, rtol=2e-5, atol=2e-5), (out, ref)

    print("KERNEL_OK")
</pallas_src>

<mosaic_0001>
module attributes {stable_mosaic.version = 11 : i64} {
  func.func @kernel(%arg0: i32, %arg1: memref<24x128xf32, #tpu.memory_space<vmem>>, %arg2: memref<128x128xf32, #tpu.memory_space<vmem>>, %arg3: memref<8x128xf32, #tpu.memory_space<vmem>>) attributes {dimension_semantics = [#tpu.dimension_semantics<parallel>], iteration_bounds = array<i64: 2>, scalar_prefetch = 0 : i64, scratch_operands = 0 : i64, tpu.core_type = #tpu.core_type<tc>, window_params = [{transform_indices = @transform_0, window_bounds = array<i64: 24, 128>}, {pipeline_mode = #tpu.pipeline_mode<synchronous>, transform_indices = @transform_1, window_bounds = array<i64: 128, 128>}, {transform_indices = @transform_2, window_bounds = array<i64: 8, 128>}]} {
    %c0 = arith.constant 0 : index
    %c0_0 = arith.constant 0 : index
    %0 = vector.load %arg1[%c0, %c0_0] : memref<24x128xf32, #tpu.memory_space<vmem>>, vector<24x128xf32>
    %1 = arith.mulf %0, %0 : vector<24x128xf32>
    %cst = arith.constant dense<0.000000e+00> : vector<24xf32>
    %2 = vector.multi_reduction <add>, %1, %cst [1] : vector<24x128xf32> to vector<24xf32>
    %3 = vector.shape_cast %2 : vector<24xf32> to vector<24x1xf32>
    %cst_1 = arith.constant 1.000000e-24 : f32
    %4 = vector.broadcast %cst_1 : f32 to vector<24x1xf32>
    %5 = arith.maximumf %3, %4 : vector<24x1xf32>
    %6 = math.rsqrt %5 : vector<24x1xf32>
    %7 = arith.mulf %6, %6 : vector<24x1xf32>
    %8 = arith.mulf %3, %7 : vector<24x1xf32>
    %c0_2 = arith.constant 0 : index
    %c0_3 = arith.constant 0 : index
    %9 = vector.load %arg2[%c0_2, %c0_3] : memref<128x128xf32, #tpu.memory_space<vmem>>, vector<128x128xf32>
    %cst_4 = arith.constant dense<0.000000e+00> : vector<24x128xf32>
    %10 = tpu.matmul %0, %9, %cst_4 {dimension_numbers = #tpu.dot_dimension_numbers<[1], [0], [0], [1], [0, 0, 1, 1], [], []>} : vector<24x128xf32>, vector<128x128xf32>, vector<24x128xf32> -> vector<24x128xf32>
    %cst_5 = arith.constant 1.000000e+00 : f32
    %11 = vector.broadcast %cst_5 : f32 to vector<24x1xf32>
    %12 = arith.addf %8, %11 : vector<24x1xf32>
    %13 = vector.broadcast %6 : vector<24x1xf32> to vector<24x128xf32>
    %14 = arith.mulf %10, %13 : vector<24x128xf32>
    %cst_6 = arith.constant 2.000000e+00 : f32
    %15 = vector.broadcast %cst_6 : f32 to vector<24x128xf32>
    %16 = arith.mulf %15, %14 : vector<24x128xf32>
    %17 = vector.broadcast %12 : vector<24x1xf32> to vector<24x128xf32>
    %18 = arith.subf %17, %16 : vector<24x128xf32>
    %cst_7 = arith.constant 0.000000e+00 : f32
    %19 = vector.broadcast %cst_7 : f32 to vector<24x128xf32>
    %20 = arith.maximumf %18, %19 : vector<24x128xf32>
    %21 = math.sqrt %20 : vector<24x128xf32>
    %cst_8 = arith.constant 5.000000e-01 : f32
    %22 = vector.broadcast %cst_8 : f32 to vector<24x128xf32>
    %23 = arith.mulf %21, %22 : vector<24x128xf32>
    %cst_9 = arith.constant 0.000000e+00 : f32
    %cst_10 = arith.constant 1.000000e+00 : f32
    %24 = vector.broadcast %cst_9 : f32 to vector<24x128xf32>
    %25 = arith.maximumf %24, %23 : vector<24x128xf32>
    %26 = vector.broadcast %cst_10 : f32 to vector<24x128xf32>
    %27 = arith.minimumf %26, %25 : vector<24x128xf32>
    %cst_11 = arith.constant 5.000000e-01 : f32
    %28 = vector.broadcast %cst_11 : f32 to vector<24x128xf32>
    %29 = arith.cmpf ogt, %27, %28 : vector<24x128xf32>
    %cst_12 = arith.constant 1.000000e+00 : f32
    %30 = vector.broadcast %cst_12 : f32 to vector<24x128xf32>
    %31 = arith.subf %30, %27 : vector<24x128xf32>
    %cst_13 = arith.constant 5.000000e-01 : f32
    %32 = vector.broadcast %cst_13 : f32 to vector<24x128xf32>
    %33 = arith.mulf %31, %32 : vector<24x128xf32>
    %cst_14 = arith.constant 0.000000e+00 : f32
    %34 = vector.broadcast %cst_14 : f32 to vector<24x128xf32>
    %35 = arith.maximumf %33, %34 : vector<24x128xf32>
    %36 = math.sqrt %35 : vector<24x128xf32>
    %37 = arith.select %29, %36, %27 : vector<24x128xi1>, vector<24x128xf32>
    %38 = arith.mulf %37, %37 : vector<24x128xf32>
    %cst_15 = arith.constant 4.216320e-02 : f32
    %39 = vector.broadcast %cst_15 : f32 to vector<24x128xf32>
    %40 = arith.mulf %39, %38 : vector<24x128xf32>
    %cst_16 = arith.constant 0.024181312 : f32
    %41 = vector.broadcast %cst_16 : f32 to vector<24x128xf32>
    %42 = arith.addf %40, %41 : vector<24x128xf32>
    %43 = arith.mulf %42, %38 : vector<24x128xf32>
    %cst_17 = arith.constant 0.0454700254 : f32
    %44 = vector.broadcast %cst_17 : f32 to vector<24x128xf32>
    %45 = arith.addf %43, %44 : vector<24x128xf32>
    %46 = arith.mulf %45, %38 : vector<24x128xf32>
    %cst_18 = arith.constant 0.0749530047 : f32
    %47 = vector.broadcast %cst_18 : f32 to vector<24x128xf32>
    %48 = arith.addf %46, %47 : vector<24x128xf32>
    %49 = arith.mulf %48, %38 : vector<24x128xf32>
    %cst_19 = arith.constant 0.166667521 : f32
    %50 = vector.broadcast %cst_19 : f32 to vector<24x128xf32>
    %51 = arith.addf %49, %50 : vector<24x128xf32>
    %52 = arith.mulf %37, %38 : vector<24x128xf32>
    %53 = arith.mulf %52, %51 : vector<24x128xf32>
    %54 = arith.addf %37, %53 : vector<24x128xf32>
    %cst_20 = arith.constant 2.000000e+00 : f32
    %55 = vector.broadcast %cst_20 : f32 to vector<24x128xf32>
    %56 = arith.mulf %55, %54 : vector<24x128xf32>
    %cst_21 = arith.constant 1.57079637 : f32
    %57 = vector.broadcast %cst_21 : f32 to vector<24x128xf32>
    %58 = arith.subf %57, %56 : vector<24x128xf32>
    %59 = arith.select %29, %58, %54 : vector<24x128xi1>, vector<24x128xf32>
    %cst_22 = arith.constant 2.000000e+00 : f32
    %60 = vector.broadcast %cst_22 : f32 to vector<24x128xf32>
    %61 = arith.mulf %60, %59 : vector<24x128xf32>
    %62 = arith.mulf %61, %59 : vector<24x128xf32>
    %63 = tpu.iota {dimensions = array<i32: 0>} : vector<24x128xi32>
    %c24_i32 = arith.constant 24 : i32
    %64 = arith.muli %arg0, %c24_i32 : i32
    %65 = vector.broadcast %64 : i32 to vector<24x128xi32>
    %66 = arith.addi %63, %65 : vector<24x128xi32>
    %67 = tpu.iota {dimensions = array<i32: 1>} : vector<24x128xi32>
    %c40_i32 = arith.constant 40 : i32
    %68 = vector.broadcast %c40_i32 : i32 to vector<24x128xi32>
    %69 = arith.cmpi slt, %66, %68 : vector<24x128xi32>
    %c3_i32 = arith.constant 3 : i32
    %70 = vector.broadcast %c3_i32 : i32 to vector<24x128xi32>
    %71 = arith.cmpi slt, %67, %70 : vector<24x128xi32>
    %72 = arith.andi %69, %71 : vector<24x128xi1>
    %cst_23 = arith.constant 0.000000e+00 : f32
    %73 = vector.broadcast %cst_23 : f32 to vector<24x128xf32>
    %74 = arith.select %72, %62, %73 : vector<24x128xi1>, vector<24x128xf32>
    %75 = vector.extract_strided_slice %74 {offsets = [0, 0], sizes = [8, 128], strides = [1, 1]} : vector<24x128xf32> to vector<8x128xf32>
    %76 = vector.extract_strided_slice %74 {offsets = [8, 0], sizes = [8, 128], strides = [1, 1]} : vector<24x128xf32> to vector<8x128xf32>
    %77 = arith.addf %75, %76 : vector<8x128xf32>
    %78 = vector.extract_strided_slice %74 {offsets = [16, 0], sizes = [8, 128], strides = [1, 1]} : vector<24x128xf32> to vector<8x128xf32>
    %79 = arith.addf %77, %78 : vector<8x128xf32>
    %c0_24 = arith.constant 0 : index
    %c0_25 = arith.constant 0 : index
    %80 = vector.load %arg3[%c0_24, %c0_25] : memref<8x128xf32, #tpu.memory_space<vmem>>, vector<8x128xf32>
    tpu.vector_store %arg3[%c0_24, %c0_25], %79 {strides = array<i32>} : memref<8x128xf32, #tpu.memory_space<vmem>>, vector<8x128xf32>,
    return
  }
  func.func @transform_0(%arg0: i32) -> (i32, i32) {
    %c0_i32 = arith.constant 0 : i32
    %c0_i32_0 = arith.constant 0 : i32
    return %arg0, %c0_i32 : i32, i32
  }
  func.func @transform_1(%arg0: i32) -> (i32, i32) {
    %c0_i32 = arith.constant 0 : i32
    %c0_i32_0 = arith.constant 0 : i32
    %c0_i32_1 = arith.constant 0 : i32
    return %c0_i32, %c0_i32_0 : i32, i32
  }
  func.func @transform_2(%arg0: i32) -> (i32, i32) {
    %c0_i32 = arith.constant 0 : i32
    %c0_i32_0 = arith.constant 0 : i32
    return %arg0, %c0_i32 : i32, i32
  }
}

</mosaic_0001>

<bundles_post_ra>
// kernel: tpu_custom_call.1
= control target key start
LH: loop header
LB: loop body
LE: loop exit
PB: predicated region body
PF: predicated region fallthrough
CT: control target
= control target key end

     0   :  { %7 = vsyncpa [#allocation3], 0  ;;  %s1124_s0 = inlined_call_operand.hbm [shape: f32[48,128], index: 0, kind: input, shape index: {}]   ;;  %s1125_s1 = inlined_call_operand.hbm [shape: f32[128,128], index: 1, kind: input, shape index: {}]   ;;  %s1126_s2 = inlined_call_operand.hbm [shape: f32[16,128], index: 2, kind: output, shape index: {}]  }
   0x1   :  { %9 = vsyncpa [#allocation3 + $0x1], 0 }
   0x2   :  { %10 = vsyncpa [#allocation6], 0 }
   0x3   :  { %11 = vsyncpa [#allocation4], 0 }
   0x4   :  { %13 = vsyncpa [#allocation4 + $0x1], 0  ;;  %s880_s9 = smov 0   ;;  %s882_s10 = smov 0  }
   0x5   :  { %s884_s11 = smov 0   ;;  %s886_s12 = smov 0  }
   0x6 LB: > { %s901_s13 = sadd.s32 4294967295, %s856_s12   ;;  %s548_s14 = sadd.s32 4294967294, %s856_s12   ;;  %s856_s12 = sphi %s886_s12, %s1148_s12   ;;  %s852_s11 = sphi %s884_s11, %s1147_s11   ;;  %s848_s10 = sphi %s882_s10, %s1146_s10   ;;  %s844_s9 = sphi %s880_s9, %s1145_s9  }
   0x7   : > { %p39_p0 = scmp.ne.s32.totalorder %s848_s10, %s844_s9  ;;  %p1127_p1 = scmp.eq.s32.totalorder %s901_s13, 0 }
   0x8   : > { %p90_p3 = scmp.eq.s32.totalorder %s548_s14, 1  ;;  %p549_p5 = scmp.ge.s32.totalorder %s856_s12, 1 }
   0x9   : > { %p910_p4 = por %p1127_p1, %p39_p0  ;;  %p97_p7 = scmp.lt.s32.totalorder %s856_s12, 3 }
   0xa   : > { %p915_p6 = por %p90_p3, %p39_p0  ;;  %s858_s18 = smov [#allocation5]  }
   0xb   : > { %s1131_s15 = scalar_select %p910_p4, 1, 0 }
   0xc   : > { %s1132_s16 = scalar_select %p915_p6, 1, 0 }
   0xd   : > { %p920_p8 = pnand %p549_p5, %p97_p7  ;;  %s109_s19 = sshll.u32 %s858_s18, 4  ;;  %s110_s19 = int_to_ptr.vmem [resolvable:$true] %s109_s19 }
   0xe   : > { %s934_s21 = sadd.s32 1, %s856_s12   ;;  %s26_s22 = sadd.s32 1, %s852_s11 }
   0xf   : > { %s1133_s17 = scalar_select %p920_p8, 1, 0 }
  0x10   : > { %p663_p9 = pneg %p920_p8  ;;  %s23_s23 = ssub.s32 %s856_s12, %s934_s21 }
  0x11   : > { %s745_s24 = scalar_lea.vmem %s110_s19, 2048  ;;  %p753_p5 = scmp.lt.s32.totalorder %s110_s19, %s110_s19 }
  0x12   : > { %p929_p11 = pnand %p663_p9, %p1127_p1  ;;  %p746_p13 = scmp.ne.s32.totalorder %s110_s19, %s745_s24 }
  0x13   : > { %p754_p7 = scmp.lt.s32.totalorder %s745_s24, %s745_s24 }
  0x14   : > { %p736_p12 = pneg %p929_p11 }
  0x15   : > { %p755_p10 = por %p754_p7, %p753_p5 }
  0x16   : > { %p748_p0 = pnand %p746_p13, %p736_p12 }
  0x18   : > { %p749_p3 = pneg %p748_p0 }
  0x1a   : > { %p756_p2 = pnand %p755_p10, %p749_p3 }
  0x1c   : > { %759 = shalt.err (!%p756_p2)
}
  0x1d   : > { %s859_s25 = smov 128   ;;  %s860_s26 = smov 8  }
  0x1e   : > { %666 = dma.hbm_to_vmem [thread:$0]  (!%p929_p11), %s1125_s1, 2048, %s110_s19, [#allocation6], %s859_s25, %s859_s25, %s860_s26  }
  0x1f   : > { %p24_p2 = scmp.eq.s32.totalorder %s23_s23, 0  ;;  %p33_p9 = scmp.ne.s32.totalorder %s852_s11, %s848_s10 }
  0x20   : > { %p34_p10 = scmp.eq.s32.totalorder %s856_s12, 0  ;;  %p676_p12 = scmp.lt.s32.totalorder %s856_s12, 2 }
  0x21   : > { %s954_s29 = scalar_select %p24_p2, %s852_s11, %s26_s22  }
  0x22   : > { %p35_p13 = por %p34_p10, %p33_p9  ;;  %p1135_p0 = scmp.eq.s32.totalorder %s901_s13, 1 }
  0x23   : > { %s123_s3 = sand.u32 1, %s852_s11   ;;  %s560_s4 = smul.u32 384, %s856_s12 }
  0x24   : > { %p958_p3 = por %p1135_p0, %p33_p9  ;;  %s653_s5 = smul.u32 24, %s123_s3 }
  0x25   : > { %p964_p5 = pnand %p676_p12, %p35_p13  ;;  %s971_s14 = scalar_lea.hbm %s1124_s0, %s560_s4 }
  0x26   : > { %s1136_s30 = scalar_select %p958_p3, 1, 0 }
  0x27   : > { %s127_s18 = scalar_lea.vmem [#allocation2], %s653_s5  ;;  %s975_s20 = scalar_lea.sflag [#allocation3], %s123_s3 }
  0x28   : > { %s134_s19 = sshll.u32 %s127_s18, 4  ;;  %s760_s22 = scalar_lea.hbm %s971_s14, 384  ;;  %s973_s19 = int_to_ptr.vmem [resolvable:$true] %s134_s19 }
  0x29   : > { %p761_p11 = scmp.ne.s32.totalorder %s971_s14, %s760_s22  ;;  %p762_p7 = pneg %p964_p5 }
  0x2a   : > { %s765_s27 = scalar_lea.hbm %s1124_s0, 768  ;;  %p766_p10 = scmp.lt.s32.totalorder %s971_s14, %s1124_s0 }
  0x2b   : > { %p763_p2 = pnand %p762_p7, %p761_p11  ;;  %p767_p12 = scmp.lt.s32.totalorder %s765_s27, %s760_s22 }
  0x2d   : > { %p764_p9 = pneg %p763_p2  ;;  %p768_p13 = por %p767_p12, %p766_p10 }
  0x2f   : > { %p769_p0 = pnand %p768_p13, %p764_p9 }
  0x31   : > { %772 = shalt.err (!%p769_p0)
}
  0x32   : > { %s773_s3 = scalar_lea.vmem %s973_s19, 384  ;;  %s861_s5 = smov [#allocation2]  }
  0x33   : > { %p774_p1 = scmp.ne.s32.totalorder %s973_s19, %s773_s3  ;;  %s778_s7 = sshll.u32 %s861_s5, 4  ;;  %s779_s7 = int_to_ptr.vmem [resolvable:$false] %s778_s7 }
  0x34   : > { %s780_s8 = scalar_lea.vmem %s779_s7, 768  ;;  %p781_p2 = scmp.lt.s32.totalorder %s973_s19, %s779_s7 }
  0x35   : > { %p776_p6 = pnand %p774_p1, %p762_p7  ;;  %p782_p3 = scmp.lt.s32.totalorder %s780_s8, %s773_s3 }
  0x37   : > { %p777_p11 = pneg %p776_p6  ;;  %p783_p4 = por %p782_p3, %p781_p2 }
  0x39   : > { %p784_p8 = pnand %p783_p4, %p777_p11 }
  0x3b   : > { %787 = shalt.err (!%p784_p8)
}
  0x3c   : > { %670 = dma.hbm_to_vmem [thread:$0]  (!%p964_p5), %s971_s14, 384, %s973_s19, %s975_s20, %s859_s25, %s859_s25, %s860_s26  }
  0x3d   : > { %p1138_p1 = scmp.ne.s32.totalorder %s1133_s17, 0 }
  0x3e   : > { %s1002_s18 = sand.u32 (!%p1138_p1), 1, %s848_s10   ;;  %p1139_p4 = scmp.ne.s32.totalorder (!%p1138_p1), %s1131_s15, 0 }
  0x3f   : > { %146 = sbr.rel (%p1138_p1) target bundleno = 407 (0x197), region = 28  ;;  %s149_s23 = scalar_lea.sflag (!%p1138_p1), [#allocation3], %s1002_s18 }
  0x40   : > { %s654_s22 = smul.u32 (!%p1138_p1), 24, %s1002_s18 }
  0x42   : > { %s1006_s24 = scalar_lea.vmem (!%p1138_p1), [#allocation2], %s654_s22 }
  0x44   : > { %831 = dma.done.wait (%p1139_p4), %s149_s23, 384  }
  0x45   : > { %833 = vsyncadd (%p1139_p4), %s149_s23, 4294966912  ;;  %p1140_p6 = scmp.eq.s32.totalorder %s901_s13, 0 }
  0x47   : > { %835 = dma.done.wait (%p1140_p6), [#allocation6], 2048   ;;  %p1141_p8 = pmov %p1140_p6 }
  0x48   : > { %v862_v0 = vmov 0.0   ;;  %vm863_vm0 = vmmov 0   ;;  %v217_v1 = vld [vmem:[#allocation5 + $0x78] sm:$0xff]  ;;  %v216_v2 = vld [vmem:[#allocation5 + $0x70] sm:$0xff]  ;;  %v215_v3 = vld [vmem:[#allocation5 + $0x68] sm:$0xff]  ;;  %s434_s15 = smul.u32 24, %s901_s13 }
  0x49   : > { %837 = vsyncadd (%p1141_p8), [#allocation6], 4294965248  ;;  %580 = vmatprep.subr.mxu0 %v862_v0  ;;  %621 = vmatprep.subr.mxu1 %v862_v0  ;;  %v214_v4 = vld [vmem:[#allocation5 + $0x60] sm:$0xff]  ;;  %v213_v5 = vld [vmem:[#allocation5 + $0x58] sm:$0xff]  ;;  %s555_s17 = sshll.u32 %s1002_s18, 3  ;;  %s557_s25 = sshll.u32 %s901_s13, 7 }
  0x4a   : > { %612 = vmatprep.mubr.msk.f32.mxu0 %vm863_vm0, %v862_v0  ;;  %615 = vmatprep.mubr.msk.f32.mxu1 %vm863_vm0, %v862_v0  ;;  %v212_v6 = vld [vmem:[#allocation5 + $0x50] sm:$0xff]  ;;  %v211_v7 = vld [vmem:[#allocation5 + $0x48] sm:$0xff]  ;;  %v210_v8 = vld [vmem:[#allocation5 + $0x40] sm:$0xff]  ;;  %s176_s26 = scalar_lea.vmem [#allocation7], %s555_s17  ;;  %s466_s20 = scalar_lea.hbm %s1126_s2, %s557_s25 }
  0x4b   : > { %581 = vmatpush3.msra.mxu0 %v217_v1  ;;  %637 = vmatpush3.msra.mxu1 %v217_v1  ;;  %v209_v9 = vld [vmem:[#allocation5 + $0x38] sm:$0xff]  ;;  %v208_v10 = vld [vmem:[#allocation5 + $0x30] sm:$0xff]  ;;  %v207_v11 = vld [vmem:[#allocation5 + $0x28] sm:$0xff]  ;;  %s468_s6 = sshll.u32 %s176_s26, 4  ;;  %s455_s27 = scalar_lea.sflag [#allocation4], %s1002_s18  ;;  %s469_s6 = int_to_ptr.vmem [resolvable:$true] %s468_s6 }
  0x4c   : > { %582 = vmatprep.subr.mxu0 %v862_v0  ;;  %622 = vmatprep.subr.mxu1 %v862_v0  ;;  %v206_v12 = vld [vmem:[#allocation5 + $0x20] sm:$0xff]  ;;  %v205_v13 = vld [vmem:[#allocation5 + $0x18] sm:$0xff]  ;;  %v204_v14 = vld [vmem:[#allocation5 + $0x10] sm:$0xff]  ;;  %s788_s28 = scalar_lea.vmem %s469_s6, 128  ;;  %p1142_p5 = scmp.ne.s32.totalorder %s1136_s30, 0 }
  0x4d   : > { %583 = vmatpush3.msra.mxu0 %v216_v2  ;;  %638 = vmatpush3.msra.mxu1 %v216_v2  ;;  %v203_v15 = vld [vmem:[#allocation5 + $0x8] sm:$0xff]  ;;  %v202_v16 = vld [vmem:[#allocation5] sm:$0xff]  ;;  %v179_v18 = vld [vmem:[%s1006_s24 + $0x8] sm:$0xff]  ;;  %p789_p3 = scmp.ne.s32.totalorder %s469_s6, %s788_s28  ;;  %s864_s4 = smov [#allocation7]  }
  0x4e   : > { %584 = vmatprep.subr.mxu0 %v862_v0  ;;  %623 = vmatprep.subr.mxu1 %v862_v0  ;;  %v178_v17 = vld [vmem:[%s1006_s24] sm:$0xff]  ;;  %v180_v19 = vld [vmem:[%s1006_s24 + $0x10] sm:$0xff]  ;;  %v182_v22 = vmul.f32 %v179_v18, %v179_v18  ;;  %s792_s3 = sshll.u32 %s864_s4, 4  ;;  %s793_s3 = int_to_ptr.vmem [resolvable:$false] %s792_s3 }
  0x4f   : > { %585 = vmatpush3.msra.mxu0 %v215_v3  ;;  %639 = vmatpush3.msra.mxu1 %v215_v3  ;;  %v181_v20 = vmul.f32 %v178_v17, %v178_v17  ;;  %v183_v21 = vmul.f32 %v180_v19, %v180_v19  ;;  %p790_p7 = pnand %p789_p3, %p1142_p5  ;;  %s794_s13 = scalar_lea.vmem %s793_s3, 256 }
  0x50   : > { %586 = vmatprep.subr.mxu0 %v862_v0  ;;  %624 = vmatprep.subr.mxu1 %v862_v0  ;;  %p795_p10 = scmp.lt.s32.totalorder %s469_s6, %s793_s3  ;;  %p796_p12 = scmp.lt.s32.totalorder %s794_s13, %s788_s28 }
  0x51   : > { %587 = vmatpush3.msra.mxu0 %v214_v4  ;;  %640 = vmatpush3.msra.mxu1 %v214_v4  ;;  %p791_p9 = pneg %p790_p7 }
  0x52   : > { %588 = vmatprep.subr.mxu0 %v862_v0  ;;  %625 = vmatprep.subr.mxu1 %v862_v0  ;;  %p797_p13 = por %p796_p12, %p795_p10 }
  0x53   : > { %589 = vmatpush3.msra.mxu0 %v213_v5  ;;  %641 = vmatpush3.msra.mxu1 %v213_v5 }
  0x54   : > { %590 = vmatprep.subr.mxu0 %v862_v0  ;;  %626 = vmatprep.subr.mxu1 %v862_v0  ;;  %p798_p0 = pnand %p797_p13, %p791_p9 }
  0x55   : > { %591 = vmatpush3.msra.mxu0 %v212_v6  ;;  %642 = vmatpush3.msra.mxu1 %v212_v6 }
  0x56   : > { %592 = vmatprep.subr.mxu0 %v862_v0  ;;  %627 = vmatprep.subr.mxu1 %v862_v0 }
  0x57   : > { %593 = vmatpush3.msra.mxu0 %v211_v7  ;;  %643 = vmatpush3.msra.mxu1 %v211_v7 }
  0x58   : > { %594 = vmatprep.subr.mxu0 %v862_v0  ;;  %628 = vmatprep.subr.mxu1 %v862_v0 }
  0x59   : > { %595 = vmatpush3.msra.mxu0 %v210_v8  ;;  %644 = vmatpush3.msra.mxu1 %v210_v8 }
  0x5a   : > { %596 = vmatprep.subr.mxu0 %v862_v0  ;;  %629 = vmatprep.subr.mxu1 %v862_v0 }
  0x5b   : > { %597 = vmatpush3.msra.mxu0 %v209_v9  ;;  %645 = vmatpush3.msra.mxu1 %v209_v9 }
  0x5c   : > { %598 = vmatprep.subr.mxu0 %v862_v0  ;;  %630 = vmatprep.subr.mxu1 %v862_v0 }
  0x5d   : > { %599 = vmatpush3.msra.mxu0 %v208_v10  ;;  %646 = vmatpush3.msra.mxu1 %v208_v10 }
  0x5e   : > { %600 = vmatprep.subr.mxu0 %v862_v0  ;;  %631 = vmatprep.subr.mxu1 %v862_v0 }
  0x5f   : > { %601 = vmatpush3.msra.mxu0 %v207_v11  ;;  %647 = vmatpush3.msra.mxu1 %v207_v11 }
  0x60   : > { %602 = vmatprep.subr.mxu0 %v862_v0  ;;  %632 = vmatprep.subr.mxu1 %v862_v0 }
  0x61   : > { %603 = vmatpush3.msra.mxu0 %v206_v12  ;;  %648 = vmatpush3.msra.mxu1 %v206_v12 }
  0x62   : > { %604 = vmatprep.subr.mxu0 %v862_v0  ;;  %633 = vmatprep.subr.mxu1 %v862_v0 }
  0x63   : > { %605 = vmatpush3.msra.mxu0 %v205_v13  ;;  %649 = vmatpush3.msra.mxu1 %v205_v13 }
  0x64   : > { %606 = vmatprep.subr.mxu0 %v862_v0  ;;  %634 = vmatprep.subr.mxu1 %v862_v0 }
  0x65   : > { %607 = vmatpush3.msra.mxu0 %v204_v14  ;;  %650 = vmatpush3.msra.mxu1 %v204_v14 }
  0x66   : > { %608 = vmatprep.subr.mxu0 %v862_v0  ;;  %635 = vmatprep.subr.mxu1 %v862_v0 }
  0x67   : > { %609 = vmatpush3.msra.mxu0 %v203_v15  ;;  %651 = vmatpush3.msra.mxu1 %v203_v15 }
  0x68   : > { %610 = vmatprep.subr.mxu0 %v862_v0  ;;  %636 = vmatprep.subr.mxu1 %v862_v0 }
  0x69   : > { %611 = vmatpush3.msra.mxu0 %v202_v16  ;;  %652 = vmatpush3.msra.mxu1 %v202_v16 }
  0x6a   : > { %613 = vmatmul.mubr.f32.vlgmr.msra.gmra.mxu0 %v178_v17  ;;  %616 = vmatmul.mubr.f32.vlgmr.msra.gmra.mxu1 %v179_v18 }
  0x6b   : > { %618 = vmatprep.mubr.msk.f32.mxu1 %vm863_vm0, %v862_v0  ;;  %184 = vadd.xlane.f32.xlu0 %v181_v20 }
  0x6c   : > { %188 = vadd.xlane.f32.xlu1 %v183_v21 }
  0x6e   : > { %619 = vmatmul.mubr.f32.gmra.mxu1 %v180_v19 }
  0x6f   : > { %186 = vadd.xlane.f32.xlu0 %v182_v22 }
  0xf4   : > { %v185_v23 = vpop.xlane.xlu0 %184 }
  0xf5   : > { %v190_v25 = vmax.f32 %v185_v23, 1e-24  ;;  %v189_v27 = vpop.xlane.xlu1 %188 }
  0xf6   : > { %v192_v28 = vmax.f32 %v189_v27, 1e-24 }
  0xf7   : > { %716 = vrsqrt.f32 %v190_v25 }
  0xf8   : > { %v187_v24 = vpop.xlane.xlu0 %186 }
  0xf9   : > { %v191_v26 = vmax.f32 %v187_v24, 1e-24 }
  0xfb   : > { %718 = vrsqrt.f32 %v191_v26 }
  0xfc   : > { %720 = vrsqrt.f32 %v192_v28 }
 0x104   : > { %v717_v29 = vpop.eup %716 }
 0x105   : > { %v196_v31 = vmul.f32 %v717_v29, %v717_v29 }
 0x107   : > { %v199_v34 = vmul.f32 %v196_v31, %v185_v23 }
 0x108   : > { %v719_v30 = vpop.eup %718 }
 0x109   : > { %v197_v32 = vmul.f32 %v719_v30, %v719_v30  ;;  %v721_v33 = vpop.eup %720  ;;  %v298_v43 = vadd.f32 1.0, %v199_v34 }
 0x10a   : > { %v198_v38 = vmul.f32 %v721_v33, %v721_v33 }
 0x10b   : > { %v200_v35 = vmul.f32 %v197_v32, %v187_v24 }
 0x10c   : > { %v201_v48 = vmul.f32 %v198_v38, %v189_v27 }
 0x10d   : > { %v299_v44 = vadd.f32 1.0, %v200_v35 }
 0x10e   : > { %v300_v56 = vadd.f32 1.0, %v201_v48 }
 0x12a   : > { %v284_v36 = vpop.f32.mrf.mxu0  ;;  %v289_v37 = vpop.f32.mrf.mxu1 }
 0x12b   : > { %v301_v39 = vmul.f32 %v717_v29, %v284_v36  ;;  %v302_v40 = vmul.f32 %v719_v30, %v289_v37 }
 0x12c   : > { %v614_v41 = vpop.f32.mrf.mxu0  ;;  %v617_v42 = vpop.f32.mrf.mxu1 }
 0x12d   : > { %v304_v45 = vmul.f32 2.0, %v301_v39  ;;  %v305_v46 = vmul.f32 2.0, %v302_v40 }
 0x12e   : > { %v294_v47 = vpop.f32.mrf.mxu1 }
 0x12f   : > { %v307_v49 = vsub.f32 %v298_v43, %v304_v45  ;;  %v308_v50 = vsub.f32 %v299_v44, %v305_v46  ;;  %v303_v51 = vmul.f32 %v721_v33, %v294_v47 }
 0x130   : > { %v620_v52 = vpop.f32.mrf.mxu1 }
 0x131   : > { %v310_v53 = vmax.f32 %v307_v49, 0.0  ;;  %v311_v54 = vmax.f32 %v308_v50, 0.0  ;;  %v306_v55 = vmul.f32 2.0, %v303_v51 }
 0x133   : > { %722 = vrsqrt.f32 %v310_v53  ;;  %v309_v57 = vsub.f32 %v300_v56, %v306_v55  ;;  %vm315_vm1 = vcmp.eq.f32.partialorder %v310_v53, inf  ;;  %v318_v62 = vand.u32 2147483648, %v310_v53 }
 0x134   : > { %724 = vrsqrt.f32 %v311_v54  ;;  %vm317_vm2 = vcmp.eq.f32.partialorder %v310_v53, 0.0  ;;  %vm322_vm3 = vcmp.eq.f32.partialorder %v311_v54, inf  ;;  %v325_v1 = vand.u32 2147483648, %v311_v54 }
 0x135   : > { %v312_v58 = vmax.f32 %v309_v57, 0.0  ;;  %vm324_vm4 = vcmp.eq.f32.partialorder %v311_v54, 0.0 }
 0x137   : > { %726 = vrsqrt.f32 %v312_v58  ;;  %vm329_vm5 = vcmp.eq.f32.partialorder %v312_v58, inf  ;;  %v332_v10 = vand.u32 2147483648, %v312_v58  ;;  %vm331_vm6 = vcmp.eq.f32.partialorder %v312_v58, 0.0 }
 0x140   : > { %v723_v59 = vpop.eup %722 }
 0x141   : > { %v725_v60 = vpop.eup %724  ;;  %v314_v61 = vmul.f32 %v723_v59, %v310_v53 }
 0x142   : > { %v321_v63 = vmul.f32 %v725_v60, %v311_v54 }
 0x143   : > { %v316_v0 = vsel %vm315_vm1, %v310_v53, %v314_v61  ;;  %v430_v61 = vlaneseq }
 0x144   : > { %v319_v2 = vsel %vm317_vm2, %v318_v62, %v316_v0  ;;  %v323_v3 = vsel %vm322_vm3, %v311_v54, %v321_v63  ;;  %v727_v6 = vpop.eup %726 }
 0x145   : > { %v326_v4 = vsel %vm324_vm4, %v325_v1, %v323_v3  ;;  %v334_v5 = vmul.f32 0.5, %v319_v2  ;;  %v328_v8 = vmul.f32 %v727_v6, %v312_v58 }
 0x146   : > { %v335_v7 = vmul.f32 0.5, %v326_v4  ;;  %v431_v4 = vshrl.u32 %v430_v61, 7 }
 0x147   : > { %v337_v9 = vmax.f32 %v334_v5, 0.0  ;;  %v330_v12 = vsel %vm329_vm5, %v312_v58, %v328_v8 }
 0x148   : > { %v338_v11 = vmax.f32 %v335_v7, 0.0  ;;  %v333_v14 = vsel %vm331_vm6, %v332_v10, %v330_v12  ;;  %v435_v12 = vstv %s434_s15 }
 0x149   : > { %v1057_v13 = vmin.f32 %v337_v9, 1.0  ;;  %v336_v16 = vmul.f32 0.5, %v333_v14 }
 0x14a   : > { %v1059_v15 = vmin.f32 %v338_v11, 1.0 }
 0x14b   : > { %v346_v17 = vsub.f32 1.0, %v1057_v13  ;;  %v339_v19 = vmax.f32 %v336_v16, 0.0  ;;  %vm343_vm10 = vcmp.gt.f32.partialorder %v1057_v13, 0.5  ;;  %v432_v16 = vadd.s32 8, %v431_v4 }
 0x14c   : > { %v347_v18 = vsub.f32 1.0, %v1059_v15  ;;  %vm344_vm12 = vcmp.gt.f32.partialorder %v1059_v15, 0.5 }
 0x14d   : > { %v349_v20 = vmul.f32 0.5, %v346_v17  ;;  %v1063_v22 = vmin.f32 %v339_v19, 1.0 }
 0x14e   : > { %v350_v21 = vmul.f32 0.5, %v347_v18 }
 0x14f   : > { %v352_v23 = vmax.f32 %v349_v20, 0.0  ;;  %v348_v25 = vsub.f32 1.0, %v1063_v22  ;;  %vm345_vm15 = vcmp.gt.f32.partialorder %v1063_v22, 0.5  ;;  %v436_v20 = vadd.s32 %v435_v12, %v431_v4 }
 0x150   : > { %v353_v24 = vmax.f32 %v350_v21, 0.0 }
 0x151   : > { %728 = vrsqrt.f32 %v352_v23  ;;  %v351_v26 = vmul.f32 0.5, %v348_v25  ;;  %vm357_vm7 = vcmp.eq.f32.partialorder %v352_v23, inf  ;;  %v360_v31 = vand.u32 2147483648, %v352_v23 }
 0x152   : > { %730 = vrsqrt.f32 %v353_v24  ;;  %vm359_vm8 = vcmp.eq.f32.partialorder %v352_v23, 0.0  ;;  %vm364_vm9 = vcmp.eq.f32.partialorder %v353_v24, inf  ;;  %v367_v34 = vand.u32 2147483648, %v353_v24 }
 0x153   : > { %v354_v27 = vmax.f32 %v351_v26, 0.0  ;;  %vm366_vm11 = vcmp.eq.f32.partialorder %v353_v24, 0.0  ;;  %v440_v25 = vand.u32 127, %v430_v61  ;;  %vm441_vm0 = vcmp.lt.s32.totalorder %v436_v20, 40 }
 0x155   : > { %732 = vrsqrt.f32 %v354_v27  ;;  %vm371_vm13 = vcmp.eq.f32.partialorder %v354_v27, inf  ;;  %v374_v44 = vand.u32 2147483648, %v354_v27  ;;  %vm373_vm14 = vcmp.eq.f32.partialorder %v354_v27, 0.0 }
 0x156   : > { %vm444_vm1 = vcmp.lt.s32.totalorder %v440_v25, 3 }
 0x157   : > { %vm445_vm3 = vmand %vm441_vm0, %vm444_vm1 }
 0x15e   : > { %v729_v28 = vpop.eup %728 }
 0x15f   : > { %v731_v29 = vpop.eup %730  ;;  %v356_v30 = vmul.f32 %v729_v28, %v352_v23  ;;  %v437_v28 = vadd.s32 %v435_v12, %v432_v16 }
 0x160   : > { %v363_v32 = vmul.f32 %v731_v29, %v353_v24 }
 0x161   : > { %v358_v33 = vsel %vm357_vm7, %v352_v23, %v356_v30  ;;  %vm442_vm2 = vcmp.lt.s32.totalorder %v437_v28, 40 }
 0x162   : > { %v361_v35 = vsel %vm359_vm8, %v360_v31, %v358_v33  ;;  %v365_v36 = vsel %vm364_vm9, %v353_v24, %v363_v32  ;;  %v733_v39 = vpop.eup %732  ;;  %vm446_vm4 = vmand %vm442_vm2, %vm444_vm1 }
 0x163   : > { %v368_v37 = vsel %vm366_vm11, %v367_v34, %v365_v36  ;;  %v376_v38 = vsel %vm343_vm10, %v361_v35, %v1057_v13  ;;  %v370_v42 = vmul.f32 %v733_v39, %v354_v27 }
 0x164   : > { %v377_v40 = vsel %vm344_vm12, %v368_v37, %v1059_v15  ;;  %v379_v41 = vmul.f32 %v376_v38, %v376_v38 }
 0x165   : > { %v380_v43 = vmul.f32 %v377_v40, %v377_v40  ;;  %v372_v46 = vsel %vm371_vm13, %v354_v27, %v370_v42  ;;  %v433_v27 = vadd.s32 16, %v431_v4 }
 0x166   : > { %v382_v45 = vmul.f32 0.0421632, %v379_v41  ;;  %v375_v48 = vsel %vm373_vm14, %v374_v44, %v372_v46  ;;  %v406_v7 = vmul.f32 %v379_v41, %v376_v38 }
 0x167   : > { %v383_v47 = vmul.f32 0.0421632, %v380_v43  ;;  %v378_v50 = vsel %vm345_vm15, %v375_v48, %v1063_v22  ;;  %v407_v9 = vmul.f32 %v380_v43, %v377_v40  ;;  %v438_v36 = vadd.s32 %v435_v12, %v433_v27 }
 0x168   : > { %v385_v49 = vadd.f32 0.024181312, %v382_v45  ;;  %v381_v52 = vmul.f32 %v378_v50, %v378_v50 }
 0x169   : > { %v386_v51 = vadd.f32 0.024181312, %v383_v47  ;;  %vm443_vm5 = vcmp.lt.s32.totalorder %v438_v36, 40 }
 0x16a   : > { %v388_v53 = vmul.f32 %v385_v49, %v379_v41  ;;  %v384_v55 = vmul.f32 0.0421632, %v381_v52  ;;  %v408_v23 = vmul.f32 %v381_v52, %v378_v50  ;;  %vm447_vm6 = vmand %vm443_vm5, %vm444_vm1 }
 0x16b   : > { %v389_v54 = vmul.f32 %v386_v51, %v380_v43 }
 0x16c   : > { %v391_v56 = vadd.f32 0.045470025, %v388_v53  ;;  %v387_v58 = vadd.f32 0.024181312, %v384_v55 }
 0x16d   : > { %v392_v57 = vadd.f32 0.045470025, %v389_v54 }
 0x16e   : > { %v394_v59 = vmul.f32 %v391_v56, %v379_v41  ;;  %v390_v62 = vmul.f32 %v387_v58, %v381_v52 }
 0x16f   : > { %v395_v60 = vmul.f32 %v392_v57, %v380_v43 }
 0x170   : > { %v397_v63 = vadd.f32 0.074953005, %v394_v59  ;;  %v393_v1 = vadd.f32 0.045470025, %v390_v62 }
 0x171   : > { %v398_v0 = vadd.f32 0.074953005, %v395_v60 }
 0x172   : > { %v400_v2 = vmul.f32 %v397_v63, %v379_v41  ;;  %v396_v5 = vmul.f32 %v393_v1, %v381_v52 }
 0x173   : > { %v401_v3 = vmul.f32 %v398_v0, %v380_v43 }
 0x174   : > { %v403_v6 = vadd.f32 0.16666752, %v400_v2  ;;  %v399_v10 = vadd.f32 0.074953005, %v396_v5 }
 0x175   : > { %v404_v8 = vadd.f32 0.16666752, %v401_v3 }
 0x176   : > { %v409_v11 = vmul.f32 %v406_v7, %v403_v6  ;;  %v402_v17 = vmul.f32 %v399_v10, %v381_v52 }
 0x177   : > { %v410_v14 = vmul.f32 %v407_v9, %v404_v8 }
 0x178   : > { %v412_v18 = vadd.f32 %v409_v11, %v376_v38  ;;  %v405_v21 = vadd.f32 0.16666752, %v402_v17 }
 0x179   : > { %v413_v19 = vadd.f32 %v410_v14, %v377_v40 }
 0x17a   : > { %v415_v24 = vmul.f32 2.0, %v412_v18  ;;  %v411_v29 = vmul.f32 %v408_v23, %v405_v21 }
 0x17b   : > { %v416_v26 = vmul.f32 2.0, %v413_v19 }
 0x17c   : > { %v418_v30 = vsub.f32 1.5707964, %v415_v24  ;;  %v414_v32 = vadd.f32 %v411_v29, %v378_v50 }
 0x17d   : > { %v419_v31 = vsub.f32 1.5707964, %v416_v26 }
 0x17e   : > { %v421_v33 = vsel %vm343_vm10, %v418_v30, %v412_v18  ;;  %v417_v37 = vmul.f32 2.0, %v414_v32 }
 0x17f   : > { %v422_v34 = vsel %vm344_vm12, %v419_v31, %v413_v19  ;;  %v424_v35 = vmul.f32 2.0, %v421_v33 }
 0x180   : > { %v425_v38 = vmul.f32 2.0, %v422_v34  ;;  %v420_v40 = vsub.f32 1.5707964, %v417_v37 }
 0x181   : > { %v427_v39 = vmul.f32 %v424_v35, %v421_v33 }
 0x182   : > { %v428_v41 = vmul.f32 %v425_v38, %v422_v34  ;;  %v423_v13 = vsel %vm345_vm15, %v420_v40, %v414_v32 }
 0x183   : > { %v426_v15 = vmul.f32 2.0, %v423_v13  ;;  %v448_v42 = vsel %vm445_vm3, %v427_v39, 0.0 }
 0x184   : > { %v449_v43 = vsel %vm446_vm4, %v428_v41, 0.0 }
 0x185   : > { %v429_v44 = vmul.f32 %v426_v15, %v423_v13  ;;  %v451_v45 = vadd.f32 %v449_v43, %v448_v42 }
 0x187   : > { %v450_v46 = vsel %vm447_vm6, %v429_v44, 0.0 }
 0x188   : > { %v452_v47 = vadd.f32 %v451_v45, %v450_v46 }
 0x18a   : > { %453 = vst [vmem:[%s176_s26] sm:$0xff] %v452_v47 }
 0x18b   : > { %801 = shalt.err (!%p798_p0)
}
 0x18c   : > { %s802_s5 = scalar_lea.hbm %s466_s20, 128  ;;  %s806_s18 = scalar_lea.hbm %s1126_s2, 256 }
 0x18d   : > { %p803_p11 = scmp.ne.s32.totalorder %s466_s20, %s802_s5  ;;  %p807_p4 = scmp.lt.s32.totalorder %s466_s20, %s1126_s2 }
 0x18e   : > { %p808_p6 = scmp.lt.s32.totalorder %s806_s18, %s802_s5 }
 0x18f   : > { %p804_p2 = pnand %p803_p11, %p1142_p5 }
 0x190   : > { %p809_p8 = por %p808_p6, %p807_p4 }
 0x191   : > { %p805_p1 = pneg %p804_p2 }
 0x193   : > { %p810_p3 = pnand %p809_p8, %p805_p1 }
 0x195   : > { %813 = shalt.err (!%p810_p3)
}
 0x196   : > { %661 = dma.vmem_to_hbm [thread:$0]  (%p1142_p5), %s469_s6, 128, %s466_s20, %s455_s27  }
 0x197 PF: > { %s480_s24 = sand.u32 1, %s844_s9   ;;  %p1143_p7 = scmp.ne.s32.totalorder %s1132_s16, 0 }
 0x198   : > { %p1144_p9 = scmp.ge.s32.totalorder %s856_s12, 2  ;;  %s481_s15 = scalar_lea.sflag [#allocation4], %s480_s24 }
 0x19a   : > { %p672_p10 = pnand %p1144_p9, %p1143_p7 }
 0x19c   : > { %p673_p12 = pneg %p672_p10 }
 0x19e   : > { %839 = dma.done.wait (%p673_p12), %s481_s15, 128  }
 0x19f   : > { %841 = vsyncadd (%p673_p12), %s481_s15, 4294967168  ;;  %p16_p13 = scmp.ge.s32.totalorder %s934_s21, 4   ;;  %s1145_s9 = smov %s848_s10 }
 0x1a0   : > { %s1146_s10 = smov %s852_s11  ;;  %s1147_s11 = smov %s954_s29 }
 0x1a1   : > { %s1148_s12 = smov %s934_s21  ;;  %18 = sbr.rel (!%p16_p13) target bundleno = 6 (0x6), region = 77 }
 0x1a6   :  { %486 = vsyncpa [#allocation3], 1 }
 0x1a7   :  { %488 = vsyncpa [#allocation3 + $0x1], 1 }
 0x1a8   :  { %489 = vsyncpa [#allocation6], 1 }
 0x1a9   :  { %490 = vsyncpa [#allocation4], 1 }
 0x1aa   :  { %492 = vsyncpa [#allocation4 + $0x1], 1 }

</bundles_post_ra>
